<compile_context>
chip_gen: v7x
topology: tpu7x:2x2x1
jax: 0.10.0
libtpu: 0.0.40
codegen_flags: <defaults>
</compile_context>

<pallas_src>
import functools

import jax
import jax.numpy as jnp
from jax.experimental import pallas as pl
from jax.experimental.pallas import tpu as pltpu

f32 = jnp.float32
bf16 = jnp.bfloat16


def _vmem_spec():
    # whole-array block resident in VMEM (all shapes here are tiny)
    return pl.BlockSpec(memory_space=pltpu.MemorySpace.VMEM)


# ----------------------------- Pallas kernels ------------------------------

def _matmul_affine_kernel(relu, x_ref, w_ref, b_ref, o_ref):
    # x: [tm, K] bf16 im2col patches, w: [K, O] bf16 BN-folded weight,
    # b: [1, O] f32 BN shift.  Fused conv + BN + (ReLU).
    y = jnp.dot(x_ref[...], w_ref[...],
                preferred_element_type=jnp.float32) + b_ref[...]
    if relu:
        y = jnp.maximum(y, 0.0)
    o_ref[...] = y


def _pool_conv_kernel(win_ref, w_ref, b_ref, xp_ref, y_ref):
    # win: [KK, M, Cin] f32 maxpool windows, w: [Cin, O] bf16, b: [1, O] f32.
    # Fused maxpool + 1x1 conv + BN + ReLU.  The pooled activation is also an
    # output because the residual downsample branch needs it later.
    xp = jnp.max(win_ref[...], axis=0)                  # vectorized window max
    xp_ref[...] = xp
    y = jnp.dot(xp.astype(bf16), w_ref[...],
                preferred_element_type=jnp.float32) + b_ref[...]
    y_ref[...] = jnp.maximum(y, 0.0)


def _bottleneck_tail_kernel(out2_ref, w3_ref, b3_ref, xid_ref, wds_ref, bds_ref,
                            pool_ref, fcw_ref, fcb_ref, o_ref):
    # conv3 (1x1) + bn3
    a = jnp.dot(out2_ref[...].astype(bf16), w3_ref[...],
                preferred_element_type=jnp.float32) + b3_ref[...]
    # downsample conv (1x1) + bn
    d = jnp.dot(xid_ref[...].astype(bf16), wds_ref[...],
                preferred_element_type=jnp.float32) + bds_ref[...]
    # residual add + relu
    y = jnp.maximum(a + d, 0.0)                          # [N*HW, C]
    # global average pool as a tiny matmul with a constant pooling matrix
    feat = jnp.dot(pool_ref[...], y, preferred_element_type=jnp.float32)  # [N, C]
    # fc
    o_ref[...] = jnp.dot(feat, fcw_ref[...],
                         preferred_element_type=jnp.float32) + fcb_ref[...]


# ------------------------------ kernel wrappers -----------------------------

def fused_conv_matmul(pat, w, shift, relu):
    """relu((pat @ w) + shift): one pallas_call per SplitConv2d (+ folded BN).

    M-tiled grid with "parallel" semantics so v7x can shard rows across its two
    TensorCores; on v5e/v6e it is a cheap sequential loop.
    """
    M, K = pat.shape
    O = w.shape[1]
    tm = 64 if (M > 64 and M % 64 == 0) else M
    grid = (M // tm,)
    return pl.pallas_call(
        functools.partial(_matmul_affine_kernel, relu),
        out_shape=jax.ShapeDtypeStruct((M, O), f32),
        grid=grid,
        in_specs=[
            pl.BlockSpec((tm, K), lambda i: (i, 0)),
            pl.BlockSpec((K, O), lambda i: (0, 0)),
            pl.BlockSpec((1, O), lambda i: (0, 0)),
        ],
        out_specs=pl.BlockSpec((tm, O), lambda i: (i, 0)),
        compiler_params=pltpu.CompilerParams(
            dimension_semantics=("parallel",)),
    )(pat.astype(bf16), w.astype(bf16), shift.reshape(1, O).astype(f32))


def maxpool_conv_bn_relu(windows, w, shift):
    KK, M, Cin = windows.shape
    O = w.shape[1]
    return pl.pallas_call(
        _pool_conv_kernel,
        out_shape=(jax.ShapeDtypeStruct((M, Cin), f32),
                   jax.ShapeDtypeStruct((M, O), f32)),
        in_specs=[_vmem_spec()] * 3,
        out_specs=(_vmem_spec(), _vmem_spec()),
    )(windows.astype(f32), w.astype(bf16), shift.reshape(1, O).astype(f32))


def bottleneck_tail(out2, w3, b3, x_id, wds, bds, fc_w, fc_b, n, hw):
    M = out2.shape[0]
    O = w3.shape[1]
    ncls = fc_w.shape[0]
    # constant [n, n*hw] average-pooling matrix (1/hw on each image's rows)
    pool = jnp.kron(jnp.eye(n, dtype=f32), jnp.ones((1, hw), f32)) * (1.0 / hw)
    return pl.pallas_call(
        _bottleneck_tail_kernel,
        out_shape=jax.ShapeDtypeStruct((n, ncls), f32),
        in_specs=[_vmem_spec()] * 9,
        out_specs=_vmem_spec(),
    )(out2.astype(f32), w3.astype(bf16), b3.reshape(1, O).astype(f32),
      x_id.astype(f32), wds.astype(bf16), bds.reshape(1, O).astype(f32),
      pool, fc_w.T.astype(f32), fc_b.reshape(1, ncls).astype(f32))


# ------------------------------- glue / ops --------------------------------

def distribute_channels(total_channels, num_splits):
    # exact reproduction of SplitResnet.distribute_channels (+SplitConv2d asserts)
    base = total_channels // num_splits
    remainder = total_channels % num_splits
    parts = [base] * num_splits
    for i in range(remainder):
        parts[i] += 1
    assert len(parts) >= 2 and all(p > 0 for p in parts)
    return parts


def fold_bn(conv_w_oihw, bn, eps=1e-5):
    """Fold inference-mode BatchNorm into the conv weight/bias.

    Returns (w2d [KH*KW*Cin, O], shift [O]) with (kh, kw, cin) row ordering.
    """
    O, I, KH, KW = conv_w_oihw.shape
    scale = bn['gamma'] / jnp.sqrt(bn['var'] + eps)          # [O]
    shift = bn['beta'] - bn['mean'] * scale                  # [O]
    w2d = jnp.transpose(conv_w_oihw, (2, 3, 1, 0)).reshape(KH * KW * I, O)
    return w2d * scale[None, :], shift


def _extract_patches(x_nhwc, kh, kw, stride, padding):
    # im2col -> [N*Ho*Wo, KH*KW*C] with (kh, kw, cin) column ordering.
    N, H, W, C = x_nhwc.shape
    Ho = (H + 2 * padding - kh) // stride + 1
    Wo = (W + 2 * padding - kw) // stride + 1
    xp = jnp.pad(x_nhwc, ((0, 0), (padding, padding), (padding, padding), (0, 0)))
    cols = [xp[:, i:i + stride * Ho:stride, j:j + stride * Wo:stride, :]
            for i in range(kh) for j in range(kw)]
    patches = jnp.stack(cols, axis=3)                        # [N, Ho, Wo, KK, C]
    return patches.reshape(N * Ho * Wo, kh * kw * C), Ho, Wo


def _maxpool_windows(x_nhwc, k, stride, padding):
    # window stack [k*k, N*Ho*Wo, C]; padding uses -inf (ignored by the max)
    N, H, W, C = x_nhwc.shape
    Ho = (H + 2 * padding - k) // stride + 1
    Wo = (W + 2 * padding - k) // stride + 1
    xp = jnp.pad(x_nhwc, ((0, 0), (padding, padding), (padding, padding), (0, 0)),
                 constant_values=-jnp.inf)
    wins = [xp[:, i:i + stride * Ho:stride, j:j + stride * Wo:stride, :]
            for i in range(k) for j in range(k)]
    return jnp.stack(wins, axis=0).reshape(k * k, N * Ho * Wo, C), Ho, Wo


# --------------------------- parameters / model -----------------------------

def init_params(key):
    keys = iter(jax.random.split(key, 40))

    def w(shape, scale=0.1):
        return (scale * jax.random.normal(next(keys), shape)).astype(f32)

    def bn(c):
        return dict(
            gamma=(1.0 + 0.1 * jax.random.normal(next(keys), (c,))).astype(f32),
            beta=(0.1 * jax.random.normal(next(keys), (c,))).astype(f32),
            mean=(0.1 * jax.random.normal(next(keys), (c,))).astype(f32),
            var=(1.0 + jax.random.uniform(next(keys), (c,))).astype(f32),
        )

    return dict(
        conv1_w=w((8, 3, 7, 7)),      bn1=bn(8),        # stem (ResNet 7x7/s2/p3)
        l1_conv1_w=w((4, 8, 1, 1)),   l1_bn1=bn(4),     # bottleneck 1x1
        l1_conv2_w=w((4, 4, 3, 3)),   l1_bn2=bn(4),     # bottleneck 3x3
        l1_conv3_w=w((16, 4, 1, 1)),  l1_bn3=bn(16),    # bottleneck 1x1 (expand)
        l1_ds_w=w((16, 8, 1, 1)),     l1_ds_bn=bn(16),  # downsample 1x1
        fc_w=w((10, 16)),             fc_b=w((10,)),    # fc (torch Linear [out, in])
    )


def split_resnet_forward(params, x_nchw, num_splits):
    p = params
    N = x_nchw.shape[0]
    x = jnp.transpose(x_nchw, (0, 2, 3, 1)).astype(f32)      # NCHW -> NHWC

    def check_split(conv_w):
        # keep the SplitConv2d bookkeeping; the single full-width matmul below is
        # bit-identical to concatenating the per-part column-slice matmuls.
        parts = distribute_channels(conv_w.shape[0], num_splits)
        assert sum(parts) == conv_w.shape[0]

    # ----- stem: SplitConv2d 7x7/s2/p3 + BN1 + ReLU (one fused matmul) -----
    check_split(p['conv1_w'])
    w1, b1 = fold_bn(p['conv1_w'], p['bn1'])
    pat1, Ho, Wo = _extract_patches(x, 7, 7, 2, 3)
    y1 = fused_conv_matmul(pat1, w1, b1, relu=True)          # [N*Ho*Wo, 8]
    y1 = y1.reshape(N, Ho, Wo, p['conv1_w'].shape[0])

    # ----- maxpool 3x3/s2/p1 fused with layer1 conv1 (1x1) + BN + ReLU -----
    check_split(p['l1_conv1_w'])
    wc1, bc1 = fold_bn(p['l1_conv1_w'], p['l1_bn1'])
    win, Hp, Wp = _maxpool_windows(y1, 3, 2, 1)              # [9, N*Hp*Wp, 8]
    x_id, out1 = maxpool_conv_bn_relu(win, wc1, bc1)         # [N*16, 8], [N*16, 4]

    # ----- layer1 conv2 (3x3/s1/p1) + BN + ReLU -----
    check_split(p['l1_conv2_w'])
    wc2, bc2 = fold_bn(p['l1_conv2_w'], p['l1_bn2'])
    out1_nhwc = out1.reshape(N, Hp, Wp, p['l1_conv1_w'].shape[0])
    pat2, _, _ = _extract_patches(out1_nhwc, 3, 3, 1, 1)     # [N*16, 36]
    out2 = fused_conv_matmul(pat2, wc2, bc2, relu=True)      # [N*16, 4]

    # ----- epilogue: conv3+BN, downsample+BN, add+ReLU, global avgpool, fc -----
    check_split(p['l1_conv3_w'])
    check_split(p['l1_ds_w'])
    wc3, bc3 = fold_bn(p['l1_conv3_w'], p['l1_bn3'])
    wds, bds = fold_bn(p['l1_ds_w'], p['l1_ds_bn'])
    logits = bottleneck_tail(out2, wc3, bc3, x_id, wds, bds,
                             p['fc_w'], p['fc_b'], N, Hp * Wp)
    return logits


if __name__ == "__main__":
    key = jax.random.PRNGKey(0)
    pkey, xkey = jax.random.split(key)
    params = init_params(pkey)
    x = jax.random.normal(xkey, (2, 3, 16, 16), dtype=f32)   # NCHW, like PyTorch
    fwd = jax.jit(functools.partial(split_resnet_forward, num_splits=3))
    logits = fwd(params, x)
    jax.block_until_ready(logits)
    assert logits.shape == (2, 10)
    assert bool(jnp.all(jnp.isfinite(logits)))
    print("KERNEL_OK")
</pallas_src>

<mosaic_0001>
module attributes {stable_mosaic.version = 11 : i64} {
  func.func @_matmul_affine_kernel(%arg0: i32, %arg1: memref<64x147xbf16, #tpu.memory_space<vmem>>, %arg2: memref<147x8xbf16, #tpu.memory_space<vmem>>, %arg3: memref<1x8xf32, #tpu.memory_space<vmem>>, %arg4: memref<64x8xf32, #tpu.memory_space<vmem>>) attributes {dimension_semantics = [#tpu.dimension_semantics<parallel>], iteration_bounds = array<i64: 2>, scalar_prefetch = 0 : i64, scratch_operands = 0 : i64, tpu.core_type = #tpu.core_type<tc>, window_params = [{transform_indices = @transform_0, window_bounds = array<i64: 64, 147>}, {pipeline_mode = #tpu.pipeline_mode<synchronous>, transform_indices = @transform_1, window_bounds = array<i64: 147, 8>}, {pipeline_mode = #tpu.pipeline_mode<synchronous>, transform_indices = @transform_2, window_bounds = array<i64: 1, 8>}, {transform_indices = @transform_3, window_bounds = array<i64: 64, 8>}]} {
    %c0 = arith.constant 0 : index
    %c0_0 = arith.constant 0 : index
    %0 = vector.load %arg1[%c0, %c0_0] : memref<64x147xbf16, #tpu.memory_space<vmem>>, vector<64x147xbf16>
    %c0_1 = arith.constant 0 : index
    %c0_2 = arith.constant 0 : index
    %1 = vector.load %arg2[%c0_1, %c0_2] : memref<147x8xbf16, #tpu.memory_space<vmem>>, vector<147x8xbf16>
    %cst = arith.constant dense<0.000000e+00> : vector<64x8xf32>
    %2 = tpu.matmul %0, %1, %cst {dimension_numbers = #tpu.dot_dimension_numbers<[1], [0], [0], [1], [0, 0, 1, 1], [], []>} : vector<64x147xbf16>, vector<147x8xbf16>, vector<64x8xf32> -> vector<64x8xf32>
    %c0_3 = arith.constant 0 : index
    %c0_4 = arith.constant 0 : index
    %3 = vector.load %arg3[%c0_3, %c0_4] : memref<1x8xf32, #tpu.memory_space<vmem>>, vector<1x8xf32>
    %4 = vector.broadcast %3 : vector<1x8xf32> to vector<64x8xf32>
    %5 = arith.addf %2, %4 : vector<64x8xf32>
    %cst_5 = arith.constant 0.000000e+00 : f32
    %6 = vector.broadcast %cst_5 : f32 to vector<64x8xf32>
    %7 = arith.maximumf %5, %6 : vector<64x8xf32>
    %c0_6 = arith.constant 0 : index
    %c0_7 = arith.constant 0 : index
    %8 = vector.load %arg4[%c0_6, %c0_7] : memref<64x8xf32, #tpu.memory_space<vmem>>, vector<64x8xf32>
    tpu.vector_store %arg4[%c0_6, %c0_7], %7 {strides = array<i32>} : memref<64x8xf32, #tpu.memory_space<vmem>>, vector<64x8xf32>,
    return
  }
  func.func @transform_0(%arg0: i32) -> (i32, i32) {
    %c0_i32 = arith.constant 0 : i32
    %c0_i32_0 = arith.constant 0 : i32
    return %arg0, %c0_i32 : i32, i32
  }
  func.func @transform_1(%arg0: i32) -> (i32, i32) {
    %c0_i32 = arith.constant 0 : i32
    %c0_i32_0 = arith.constant 0 : i32
    %c0_i32_1 = arith.constant 0 : i32
    return %c0_i32, %c0_i32_0 : i32, i32
  }
  func.func @transform_2(%arg0: i32) -> (i32, i32) {
    %c0_i32 = arith.constant 0 : i32
    %c0_i32_0 = arith.constant 0 : i32
    %c0_i32_1 = arith.constant 0 : i32
    return %c0_i32, %c0_i32_0 : i32, i32
  }
  func.func @transform_3(%arg0: i32) -> (i32, i32) {
    %c0_i32 = arith.constant 0 : i32
    %c0_i32_0 = arith.constant 0 : i32
    return %arg0, %c0_i32 : i32, i32
  }
}

module attributes {stable_mosaic.version = 11 : i64} {
  func.func @_pool_conv_kernel(%arg0: memref<9x32x8xf32, #tpu.memory_space<vmem>>, %arg1: memref<8x4xbf16, #tpu.memory_space<vmem>>, %arg2: memref<1x4xf32, #tpu.memory_space<vmem>>, %arg3: memref<32x8xf32, #tpu.memory_space<vmem>>, %arg4: memref<32x4xf32, #tpu.memory_space<vmem>>) attributes {dimension_semantics = [], scalar_prefetch = 0 : i64, scratch_operands = 0 : i64, tpu.core_type = #tpu.core_type<tc>} {
    %c0 = arith.constant 0 : index
    %c0_0 = arith.constant 0 : index
    %c0_1 = arith.constant 0 : index
    %0 = vector.load %arg0[%c0, %c0_0, %c0_1] : memref<9x32x8xf32, #tpu.memory_space<vmem>>, vector<9x32x8xf32>
    %cst = arith.constant dense<0xFF800000> : vector<32x8xf32>
    %1 = vector.multi_reduction <maximumf>, %0, %cst [0] : vector<9x32x8xf32> to vector<32x8xf32>
    %c0_2 = arith.constant 0 : index
    %c0_3 = arith.constant 0 : index
    %2 = vector.load %arg3[%c0_2, %c0_3] : memref<32x8xf32, #tpu.memory_space<vmem>>, vector<32x8xf32>
    tpu.vector_store %arg3[%c0_2, %c0_3], %1 {strides = array<i32>} : memref<32x8xf32, #tpu.memory_space<vmem>>, vector<32x8xf32>,
    %3 = arith.truncf %1 : vector<32x8xf32> to vector<32x8xbf16>
    %c0_4 = arith.constant 0 : index
    %c0_5 = arith.constant 0 : index
    %4 = vector.load %arg1[%c0_4, %c0_5] : memref<8x4xbf16, #tpu.memory_space<vmem>>, vector<8x4xbf16>
    %cst_6 = arith.constant dense<0.000000e+00> : vector<32x4xf32>
    %5 = tpu.matmul %3, %4, %cst_6 {dimension_numbers = #tpu.dot_dimension_numbers<[1], [0], [0], [1], [0, 0, 1, 1], [], []>} : vector<32x8xbf16>, vector<8x4xbf16>, vector<32x4xf32> -> vector<32x4xf32>
    %c0_7 = arith.constant 0 : index
    %c0_8 = arith.constant 0 : index
    %6 = vector.load %arg2[%c0_7, %c0_8] : memref<1x4xf32, #tpu.memory_space<vmem>>, vector<1x4xf32>
    %7 = vector.broadcast %6 : vector<1x4xf32> to vector<32x4xf32>
    %8 = arith.addf %5, %7 : vector<32x4xf32>
    %cst_9 = arith.constant 0.000000e+00 : f32
    %9 = vector.broadcast %cst_9 : f32 to vector<32x4xf32>
    %10 = arith.maximumf %8, %9 : vector<32x4xf32>
    %c0_10 = arith.constant 0 : index
    %c0_11 = arith.constant 0 : index
    %11 = vector.load %arg4[%c0_10, %c0_11] : memref<32x4xf32, #tpu.memory_space<vmem>>, vector<32x4xf32>
    tpu.vector_store %arg4[%c0_10, %c0_11], %10 {strides = array<i32>} : memref<32x4xf32, #tpu.memory_space<vmem>>, vector<32x4xf32>,
    return
  }
}

module attributes {stable_mosaic.version = 11 : i64} {
  func.func @_matmul_affine_kernel(%arg0: i32, %arg1: memref<32x36xbf16, #tpu.memory_space<vmem>>, %arg2: memref<36x4xbf16, #tpu.memory_space<vmem>>, %arg3: memref<1x4xf32, #tpu.memory_space<vmem>>, %arg4: memref<32x4xf32, #tpu.memory_space<vmem>>) attributes {dimension_semantics = [#tpu.dimension_semantics<parallel>], iteration_bounds = array<i64: 1>, scalar_prefetch = 0 : i64, scratch_operands = 0 : i64, tpu.core_type = #tpu.core_type<tc>, window_params = [{transform_indices = @transform_0, window_bounds = array<i64: 32, 36>}, {pipeline_mode = #tpu.pipeline_mode<synchronous>, transform_indices = @transform_1, window_bounds = array<i64: 36, 4>}, {pipeline_mode = #tpu.pipeline_mode<synchronous>, transform_indices = @transform_2, window_bounds = array<i64: 1, 4>}, {transform_indices = @transform_3, window_bounds = array<i64: 32, 4>}]} {
    %c0 = arith.constant 0 : index
    %c0_0 = arith.constant 0 : index
    %0 = vector.load %arg1[%c0, %c0_0] : memref<32x36xbf16, #tpu.memory_space<vmem>>, vector<32x36xbf16>
    %c0_1 = arith.constant 0 : index
    %c0_2 = arith.constant 0 : index
    %1 = vector.load %arg2[%c0_1, %c0_2] : memref<36x4xbf16, #tpu.memory_space<vmem>>, vector<36x4xbf16>
    %cst = arith.constant dense<0.000000e+00> : vector<32x4xf32>
    %2 = tpu.matmul %0, %1, %cst {dimension_numbers = #tpu.dot_dimension_numbers<[1], [0], [0], [1], [0, 0, 1, 1], [], []>} : vector<32x36xbf16>, vector<36x4xbf16>, vector<32x4xf32> -> vector<32x4xf32>
    %c0_3 = arith.constant 0 : index
    %c0_4 = arith.constant 0 : index
    %3 = vector.load %arg3[%c0_3, %c0_4] : memref<1x4xf32, #tpu.memory_space<vmem>>, vector<1x4xf32>
    %4 = vector.broadcast %3 : vector<1x4xf32> to vector<32x4xf32>
    %5 = arith.addf %2, %4 : vector<32x4xf32>
    %cst_5 = arith.constant 0.000000e+00 : f32
    %6 = vector.broadcast %cst_5 : f32 to vector<32x4xf32>
    %7 = arith.maximumf %5, %6 : vector<32x4xf32>
    %c0_6 = arith.constant 0 : index
    %c0_7 = arith.constant 0 : index
    %8 = vector.load %arg4[%c0_6, %c0_7] : memref<32x4xf32, #tpu.memory_space<vmem>>, vector<32x4xf32>
    tpu.vector_store %arg4[%c0_6, %c0_7], %7 {strides = array<i32>} : memref<32x4xf32, #tpu.memory_space<vmem>>, vector<32x4xf32>,
    return
  }
  func.func @transform_0(%arg0: i32) -> (i32, i32) {
    %c0_i32 = arith.constant 0 : i32
    %c0_i32_0 = arith.constant 0 : i32
    return %arg0, %c0_i32 : i32, i32
  }
  func.func @transform_1(%arg0: i32) -> (i32, i32) {
    %c0_i32 = arith.constant 0 : i32
    %c0_i32_0 = arith.constant 0 : i32
    %c0_i32_1 = arith.constant 0 : i32
    return %c0_i32, %c0_i32_0 : i32, i32
  }
  func.func @transform_2(%arg0: i32) -> (i32, i32) {
    %c0_i32 = arith.constant 0 : i32
    %c0_i32_0 = arith.constant 0 : i32
    %c0_i32_1 = arith.constant 0 : i32
    return %c0_i32, %c0_i32_0 : i32, i32
  }
  func.func @transform_3(%arg0: i32) -> (i32, i32) {
    %c0_i32 = arith.constant 0 : i32
    %c0_i32_0 = arith.constant 0 : i32
    return %arg0, %c0_i32 : i32, i32
  }
}

module attributes {stable_mosaic.version = 11 : i64} {
  func.func @_bottleneck_tail_kernel(%arg0: memref<32x4xf32, #tpu.memory_space<vmem>>, %arg1: memref<4x16xbf16, #tpu.memory_space<vmem>>, %arg2: memref<1x16xf32, #tpu.memory_space<vmem>>, %arg3: memref<32x8xf32, #tpu.memory_space<vmem>>, %arg4: memref<8x16xbf16, #tpu.memory_space<vmem>>, %arg5: memref<1x16xf32, #tpu.memory_space<vmem>>, %arg6: memref<2x32xf32, #tpu.memory_space<vmem>>, %arg7: memref<16x10xf32, #tpu.memory_space<vmem>>, %arg8: memref<1x10xf32, #tpu.memory_space<vmem>>, %arg9: memref<2x10xf32, #tpu.memory_space<vmem>>) attributes {dimension_semantics = [], scalar_prefetch = 0 : i64, scratch_operands = 0 : i64, tpu.core_type = #tpu.core_type<tc>} {
    %c0 = arith.constant 0 : index
    %c0_0 = arith.constant 0 : index
    %0 = vector.load %arg0[%c0, %c0_0] : memref<32x4xf32, #tpu.memory_space<vmem>>, vector<32x4xf32>
    %1 = arith.truncf %0 : vector<32x4xf32> to vector<32x4xbf16>
    %c0_1 = arith.constant 0 : index
    %c0_2 = arith.constant 0 : index
    %2 = vector.load %arg1[%c0_1, %c0_2] : memref<4x16xbf16, #tpu.memory_space<vmem>>, vector<4x16xbf16>
    %cst = arith.constant dense<0.000000e+00> : vector<32x16xf32>
    %3 = tpu.matmul %1, %2, %cst {dimension_numbers = #tpu.dot_dimension_numbers<[1], [0], [0], [1], [0, 0, 1, 1], [], []>} : vector<32x4xbf16>, vector<4x16xbf16>, vector<32x16xf32> -> vector<32x16xf32>
    %c0_3 = arith.constant 0 : index
    %c0_4 = arith.constant 0 : index
    %4 = vector.load %arg2[%c0_3, %c0_4] : memref<1x16xf32, #tpu.memory_space<vmem>>, vector<1x16xf32>
    %5 = vector.broadcast %4 : vector<1x16xf32> to vector<32x16xf32>
    %6 = arith.addf %3, %5 : vector<32x16xf32>
    %c0_5 = arith.constant 0 : index
    %c0_6 = arith.constant 0 : index
    %7 = vector.load %arg3[%c0_5, %c0_6] : memref<32x8xf32, #tpu.memory_space<vmem>>, vector<32x8xf32>
    %8 = arith.truncf %7 : vector<32x8xf32> to vector<32x8xbf16>
    %c0_7 = arith.constant 0 : index
    %c0_8 = arith.constant 0 : index
    %9 = vector.load %arg4[%c0_7, %c0_8] : memref<8x16xbf16, #tpu.memory_space<vmem>>, vector<8x16xbf16>
    %cst_9 = arith.constant dense<0.000000e+00> : vector<32x16xf32>
    %10 = tpu.matmul %8, %9, %cst_9 {dimension_numbers = #tpu.dot_dimension_numbers<[1], [0], [0], [1], [0, 0, 1, 1], [], []>} : vector<32x8xbf16>, vector<8x16xbf16>, vector<32x16xf32> -> vector<32x16xf32>
    %c0_10 = arith.constant 0 : index
    %c0_11 = arith.constant 0 : index
    %11 = vector.load %arg5[%c0_10, %c0_11] : memref<1x16xf32, #tpu.memory_space<vmem>>, vector<1x16xf32>
    %12 = vector.broadcast %11 : vector<1x16xf32> to vector<32x16xf32>
    %13 = arith.addf %10, %12 : vector<32x16xf32>
    %14 = arith.addf %6, %13 : vector<32x16xf32>
    %cst_12 = arith.constant 0.000000e+00 : f32
    %15 = vector.broadcast %cst_12 : f32 to vector<32x16xf32>
    %16 = arith.maximumf %14, %15 : vector<32x16xf32>
    %c0_13 = arith.constant 0 : index
    %c0_14 = arith.constant 0 : index
    %17 = vector.load %arg6[%c0_13, %c0_14] : memref<2x32xf32, #tpu.memory_space<vmem>>, vector<2x32xf32>
    %cst_15 = arith.constant dense<0.000000e+00> : vector<2x16xf32>
    %18 = tpu.matmul %17, %16, %cst_15 {dimension_numbers = #tpu.dot_dimension_numbers<[1], [0], [0], [1], [0, 0, 1, 1], [], []>} : vector<2x32xf32>, vector<32x16xf32>, vector<2x16xf32> -> vector<2x16xf32>
    %c0_16 = arith.constant 0 : index
    %c0_17 = arith.constant 0 : index
    %19 = vector.load %arg7[%c0_16, %c0_17] : memref<16x10xf32, #tpu.memory_space<vmem>>, vector<16x10xf32>
    %cst_18 = arith.constant dense<0.000000e+00> : vector<2x10xf32>
    %20 = tpu.matmul %18, %19, %cst_18 {dimension_numbers = #tpu.dot_dimension_numbers<[1], [0], [0], [1], [0, 0, 1, 1], [], []>} : vector<2x16xf32>, vector<16x10xf32>, vector<2x10xf32> -> vector<2x10xf32>
    %c0_19 = arith.constant 0 : index
    %c0_20 = arith.constant 0 : index
    %21 = vector.load %arg8[%c0_19, %c0_20] : memref<1x10xf32, #tpu.memory_space<vmem>>, vector<1x10xf32>
    %22 = vector.broadcast %21 : vector<1x10xf32> to vector<2x10xf32>
    %23 = arith.addf %20, %22 : vector<2x10xf32>
    %c0_21 = arith.constant 0 : index
    %c0_22 = arith.constant 0 : index
    %24 = vector.load %arg9[%c0_21, %c0_22] : memref<2x10xf32, #tpu.memory_space<vmem>>, vector<2x10xf32>
    tpu.vector_store %arg9[%c0_21, %c0_22], %23 {strides = array<i32>} : memref<2x10xf32, #tpu.memory_space<vmem>>, vector<2x10xf32>,
    return
  }
}

</mosaic_0001>

<bundles_post_ra>
// kernel: split_resnet_forward.5
= control target key start
LH: loop header
LB: loop body
LE: loop exit
PB: predicated region body
PF: predicated region fallthrough
CT: control target
= control target key end

     0   :  { %vm142_vm0 = vcmask 1043456   ;;  %vm53_vm1 = vcmask 64512   ;;  %vm199_vm2 = vcmask 31744   ;;  %s430_s1 = inlined_call_operand.vmem [shape: bf16[8,4], index: 1, kind: input, shape index: {}]   ;;  %s431_s0 = inlined_call_operand.vmem [shape: f32[9,32,8], index: 0, kind: input, shape index: {}]   ;;  %s432_s3 = inlined_call_operand.vmem [shape: f32[32,8], index: 3, kind: output, shape index: {0}]   ;;  %s433_s2 = inlined_call_operand.vmem [shape: f32[1,4], index: 2, kind: input, shape index: {}]   ;;  %s434_s4 = inlined_call_operand.vmem [shape: f32[32,4], index: 4, kind: output, shape index: {1}]  }
   0x1   :  { %v128_v0 = vld [vmem:[%s430_s1] sm:$0xf]  ;;  %v18_v2 = vld [vmem:[%s431_s0 + $0x8] sm:$0xff]  ;;  %v19_v31 = vld [vmem:[%s431_s0 + $0x10] sm:$0xff] }
   0x2   :  { %v17_v1 = vld [vmem:[%s431_s0] sm:$0xff]  ;;  %224 = vmatprep.subr.msk.bf16.mxu0 %vm142_vm0, %v128_v0  ;;  %v144_v3 = vsel %vm142_vm0, %v128_v0, 0  ;;  %v22_v5 = vld [vmem:[%s431_s0 + $0x28] sm:$0xff]  ;;  %v71_v8 = vsel %vm53_vm1, %v18_v2, -inf  ;;  %v20_v35 = vld [vmem:[%s431_s0 + $0x18] sm:$0xff]  ;;  %v88_v41 = vsel %vm53_vm1, %v19_v31, -inf }
   0x3   :  { %v21_v4 = vld [vmem:[%s431_s0 + $0x20] sm:$0xff]  ;;  %v54_v7 = vsel %vm53_vm1, %v17_v1, -inf  ;;  %219 = vmatpush3.bf16.msra.mxu0 %v144_v3  ;;  %v26_v9 = vld [vmem:[%s431_s0 + $0x48] sm:$0xff]  ;;  %v72_v14 = vsel %vm53_vm1, %v22_v5, -inf  ;;  %v23_v36 = vld [vmem:[%s431_s0 + $0x30] sm:$0xff]  ;;  %v105_v43 = vsel %vm53_vm1, %v20_v35, -inf }
   0x4   :  { %v25_v6 = vld [vmem:[%s431_s0 + $0x40] sm:$0xff]  ;;  %v30_v11 = vld [vmem:[%s431_s0 + $0x68] sm:$0xff]  ;;  %v55_v12 = vsel %vm53_vm1, %v21_v4, -inf  ;;  %v73_v18 = vmax.f32 %v71_v8, %v72_v14  ;;  %v74_v19 = vsel %vm53_vm1, %v26_v9, -inf  ;;  %v24_v37 = vld [vmem:[%s431_s0 + $0x38] sm:$0xff]  ;;  %v89_v42 = vsel %vm53_vm1, %v23_v36, -inf }
   0x5   :  { %v29_v10 = vld [vmem:[%s431_s0 + $0x60] sm:$0xff]  ;;  %v57_v13 = vsel %vm53_vm1, %v25_v6, -inf  ;;  %v34_v16 = vld [vmem:[%s431_s0 + $0x88] sm:$0xff]  ;;  %v56_v17 = vmax.f32 %v54_v7, %v55_v12  ;;  %v76_v22 = vsel %vm53_vm1, %v30_v11, -inf  ;;  %v27_v39 = vld [vmem:[%s431_s0 + $0x50] sm:$0xff]  ;;  %v90_v49 = vmax.f32 %v88_v41, %v89_v42 }
   0x6   :  { %v33_v15 = vld [vmem:[%s431_s0 + $0x80] sm:$0xff]  ;;  %v59_v21 = vsel %vm53_vm1, %v29_v10, -inf  ;;  %v38_v23 = vld [vmem:[%s431_s0 + $0xa8] sm:$0xff]  ;;  %v75_v26 = vmax.f32 %v73_v18, %v74_v19  ;;  %v78_v30 = vsel %vm53_vm1, %v34_v16, -inf  ;;  %v31_v40 = vld [vmem:[%s431_s0 + $0x70] sm:$0xff]  ;;  %v91_v50 = vsel %vm53_vm1, %v27_v39, -inf }
   0x7   :  { %v37_v20 = vld [vmem:[%s431_s0 + $0xa0] sm:$0xff]  ;;  %v58_v25 = vmax.f32 %v56_v17, %v57_v13  ;;  %v42_v27 = vld [vmem:[%s431_s0 + $0xc8] sm:$0xff]  ;;  %v61_v29 = vsel %vm53_vm1, %v33_v15, -inf  ;;  %v80_v38 = vsel %vm53_vm1, %v38_v23, -inf  ;;  %v28_v47 = vld [vmem:[%s431_s0 + $0x58] sm:$0xff]  ;;  %v93_v54 = vsel %vm53_vm1, %v31_v40, -inf }
   0x8   :  { %v41_v24 = vld [vmem:[%s431_s0 + $0xc0] sm:$0xff]  ;;  %v63_v33 = vsel %vm53_vm1, %v37_v20, -inf  ;;  %v77_v34 = vmax.f32 %v75_v26, %v76_v22  ;;  %v46_v44 = vld [vmem:[%s431_s0 + $0xe8] sm:$0xff]  ;;  %v35_v48 = vld [vmem:[%s431_s0 + $0x90] sm:$0xff]  ;;  %v82_v53 = vsel %vm53_vm1, %v42_v27, -inf  ;;  %v106_v55 = vsel %vm53_vm1, %v24_v37, -inf }
   0x9   :  { %v45_v28 = vld [vmem:[%s431_s0 + $0xe0] sm:$0xff]  ;;  %v60_v32 = vmax.f32 %v58_v25, %v59_v21  ;;  %v65_v52 = vsel %vm53_vm1, %v41_v24, -inf  ;;  %v50_v56 = vld [vmem:[%s431_s0 + $0x108] sm:$0xff]  ;;  %v32_v60 = vld [vmem:[%s431_s0 + $0x78] sm:$0xff]  ;;  %v92_v62 = vmax.f32 %v90_v49, %v91_v50  ;;  %v84_v63 = vsel %vm53_vm1, %v46_v44, -inf }
   0xa   :  { %v79_v46 = vmax.f32 %v77_v34, %v78_v30  ;;  %v49_v51 = vld [vmem:[%s431_s0 + $0x100] sm:$0xff]  ;;  %v67_v58 = vsel %vm53_vm1, %v45_v28, -inf  ;;  %v39_v61 = vld [vmem:[%s431_s0 + $0xb0] sm:$0xff]  ;;  %v36_v0 = vld [vmem:[%s431_s0 + $0x98] sm:$0xff]  ;;  %v95_v1 = vsel %vm53_vm1, %v35_v48, -inf  ;;  %v107_v2 = vmax.f32 %v105_v43, %v106_v55 }
   0xb   :  { %v62_v45 = vmax.f32 %v60_v32, %v61_v29  ;;  %v108_v3 = vsel %vm53_vm1, %v28_v47, -inf  ;;  %v69_v5 = vsel %vm53_vm1, %v49_v51, -inf  ;;  %v43_v7 = vld [vmem:[%s431_s0 + $0xd0] sm:$0xff]  ;;  %v94_v8 = vmax.f32 %v92_v62, %v93_v54  ;;  %v40_v10 = vld [vmem:[%s431_s0 + $0xb8] sm:$0xff]  ;;  %v212_v44 = vld [vmem:[%s433_s2] ss:$0 sm:$0xff] }
   0xc   :  { %v81_v59 = vmax.f32 %v79_v46, %v80_v38  ;;  %v86_v9 = vsel %vm53_vm1, %v50_v56, -inf  ;;  %v97_v11 = vsel %vm53_vm1, %v39_v61, -inf  ;;  %v109_v12 = vmax.f32 %v107_v2, %v108_v3  ;;  %v47_v16 = vld [vmem:[%s431_s0 + $0xf0] sm:$0xff]  ;;  %v44_v19 = vld [vmem:[%s431_s0 + $0xd8] sm:$0xff] }
   0xd   :  { %v64_v57 = vmax.f32 %v62_v45, %v63_v33  ;;  %v110_v13 = vsel %vm53_vm1, %v32_v60, -inf  ;;  %v96_v17 = vmax.f32 %v94_v8, %v95_v1  ;;  %v112_v18 = vsel %vm53_vm1, %v36_v0, -inf  ;;  %v51_v24 = vld [vmem:[%s431_s0 + $0x110] sm:$0xff]  ;;  %v48_v27 = vld [vmem:[%s431_s0 + $0xf8] sm:$0xff] }
   0xe   :  { %v83_v6 = vmax.f32 %v81_v59, %v82_v53  ;;  %v99_v20 = vsel %vm53_vm1, %v43_v7, -inf  ;;  %v111_v21 = vmax.f32 %v109_v12, %v110_v13  ;;  %v114_v26 = vsel %vm53_vm1, %v40_v10, -inf  ;;  %v52_v33 = vld [vmem:[%s431_s0 + $0x118] sm:$0xff] }
   0xf   :  { %v66_v4 = vmax.f32 %v64_v57, %v65_v52  ;;  %v98_v25 = vmax.f32 %v96_v17, %v97_v11  ;;  %v101_v28 = vsel %vm53_vm1, %v47_v16, -inf  ;;  %v116_v32 = vsel %vm53_vm1, %v44_v19, -inf }
  0x10   :  { %v85_v15 = vmax.f32 %v83_v6, %v84_v63  ;;  %v113_v29 = vmax.f32 %v111_v21, %v112_v18  ;;  %v103_v34 = vsel %vm53_vm1, %v51_v24, -inf  ;;  %v118_v37 = vsel %vm53_vm1, %v48_v27, -inf }
  0x11   :  { %v68_v14 = vmax.f32 %v66_v4, %v67_v58  ;;  %v100_v31 = vmax.f32 %v98_v25, %v99_v20  ;;  %v120_v40 = vsel %vm53_vm1, %v52_v33, -inf }
  0x12   :  { %v87_v23 = vmax.f32 %v85_v15, %v86_v9  ;;  %v115_v35 = vmax.f32 %v113_v29, %v114_v26 }
  0x13   :  { %v70_v22 = vmax.f32 %v68_v14, %v69_v5  ;;  %v102_v36 = vmax.f32 %v100_v31, %v101_v28 }
  0x14   :  { %123 = vst.msk [vmem:[%s432_s3 + $0x8] sm:$0xff] %vm53_vm1, %v87_v23  ;;  %v117_v38 = vmax.f32 %v115_v35, %v116_v32 }
  0x15   :  { %122 = vst.msk [vmem:[%s432_s3] sm:$0xff] %vm53_vm1, %v70_v22  ;;  %v126_v30 = vpack.c.bf16 %v87_v23, %v70_v22  ;;  %v104_v39 = vmax.f32 %v102_v36, %v103_v34 }
  0x16   :  { %v119_v41 = vmax.f32 %v117_v38, %v118_v37 }
  0x17   :  { %220 = vmatprep.mubr.msk.bf16.mxu0 %vm53_vm1, %v126_v30  ;;  %124 = vst.msk [vmem:[%s432_s3 + $0x10] sm:$0xff] %vm53_vm1, %v104_v39 }
  0x18   :  { %v121_v42 = vmax.f32 %v119_v41, %v120_v40 }
  0x1a   :  { %125 = vst.msk [vmem:[%s432_s3 + $0x18] sm:$0xff] %vm53_vm1, %v121_v42  ;;  %v127_v43 = vpack.c.bf16 %v121_v42, %v104_v39 }
  0x1c   :  { %221 = vmatmul.mubr.msk.bf16.vlgmr.msra.gmra.mrb[0].mxu0 %vm53_vm1, %v127_v43 }
  0xef   :  { %v222_v45 = vpop.f32.mrb[0].mxu0 }
  0xf0   :  { %v189_v46 = vadd.f32 %v222_v45, %v212_v44  ;;  %v180_v47 = vpop.f32.mrb[1].mxu0 }
  0xf1   :  { %v181_v48 = vadd.f32 %v212_v44, %v180_v47  ;;  %v223_v49 = vpop.f32.mrb[2].mxu0 }
  0xf2   :  { %v197_v50 = vmax.f32 %v189_v46, 0.0  ;;  %v192_v51 = vadd.f32 %v223_v49, %v212_v44  ;;  %v183_v52 = vpop.f32.mrb[3].mxu0 }
  0xf3   :  { %v195_v53 = vmax.f32 %v181_v48, 0.0  ;;  %v184_v54 = vadd.f32 %v212_v44, %v183_v52 }
  0xf4   :  { %202 = vst.msk [vmem:[%s434_s4 + $0x10] sm:$0xff] %vm199_vm2, %v197_v50  ;;  %v198_v55 = vmax.f32 %v192_v51, 0.0 }
  0xf5   :  { %200 = vst.msk [vmem:[%s434_s4] sm:$0xff] %vm199_vm2, %v195_v53  ;;  %v196_v56 = vmax.f32 %v184_v54, 0.0 }
  0xf6   :  { %203 = vst.msk [vmem:[%s434_s4 + $0x18] sm:$0xff] %vm199_vm2, %v198_v55 }
  0xf7   :  { %201 = vst.msk [vmem:[%s434_s4 + $0x8] sm:$0xff] %vm199_vm2, %v196_v56 }

// kernel: split_resnet_forward.4
= control target key start
LH: loop header
LB: loop body
LE: loop exit
PB: predicated region body
PF: predicated region fallthrough
CT: control target
= control target key end

     0   :  { %s581_s12 = smov 0   ;;  %s670_s0 = inlined_call_operand.vmem [shape: bf16[128,147], index: 0, kind: input, shape index: {}]   ;;  %s671_s1 = inlined_call_operand.vmem [shape: bf16[147,8], index: 1, kind: input, shape index: {}]   ;;  %s672_s2 = inlined_call_operand.vmem [shape: f32[1,8], index: 2, kind: input, shape index: {}]   ;;  %s673_s3 = inlined_call_operand.vmem [shape: f32[128,8], index: 3, kind: output, shape index: {}]  }
   0x1 LB: > { %s463_s13 = sadd.s32 4294967295, %s557_s12   ;;  %p467_p0 = scmp.ge.s32.totalorder %s557_s12, 1  ;;  %s557_s12 = sphi %s581_s12, %s13_s12  }
   0x2   : > { %p139_p1 = scmp.lt.s32.totalorder %s557_s12, 3 }
   0x4   : > { %p140_p2 = pnand %p467_p0, %p139_p1 }
   0x5   : > { %v529_v0 = vld [vmem:[%s671_s1] sm:$0xff] (!%p140_p2)   ;;  %v559_v1 = vmov (!%p140_p2), 0   ;;  %v530_v2 = vld [vmem:[%s671_s1 + $0x8] sm:$0xff] (!%p140_p2)   ;;  %v531_v3 = vld [vmem:[%s671_s1 + $0x10] sm:$0xff] (!%p140_p2)   ;;  %s468_s20 = sshll.u32 (!%p140_p2), %s463_s13, 3  ;;  %vm305_vm0 = vcmask (!%p140_p2), 154624  }
   0x6   : > { %143 = sbr.rel (%p140_p2) target bundleno = 273 (0x111), region = 32  ;;  %325 = vmatprep.subr.bf16.mxu0 (!%p140_p2), %v559_v1  ;;  %499 = vmatprep.subr.bf16.mxu1 (!%p140_p2), %v559_v1  ;;  %p165_p3 = scmp.lt.s32.totalorder (!%p140_p2), %s468_s20, 15  ;;  %v532_v4 = vld [vmem:[%s671_s1 + $0x18] sm:$0xff] (!%p140_p2)   ;;  %v533_v5 = vld [vmem:[%s671_s1 + $0x20] sm:$0xff] (!%p140_p2)   ;;  %v534_v8 = vld [vmem:[%s671_s1 + $0x28] sm:$0xff] (!%p140_p2)   ;;  %vm318_vm1 = vcmask (!%p140_p2), 1040384  }
   0x7   : > { %326 = vmatpush1.bf16.msra.mxu0 (!%p140_p2), %v529_v0  ;;  %509 = vmatpush1.bf16.msra.mxu1 (!%p140_p2), %v529_v0  ;;  %v535_v9 = vld [vmem:[%s671_s1 + $0x30] sm:$0xff] (!%p140_p2)   ;;  %v536_v10 = vld [vmem:[%s671_s1 + $0x38] sm:$0xff] (!%p140_p2)   ;;  %vm319_vm2 = vcmask (!%p140_p2), 1041408   ;;  %v560_v11 = vmov (!%p140_p2), 65535   ;;  %v537_v13 = vld [vmem:[%s671_s1 + $0x40] sm:$0xff] (!%p140_p2)   ;;  %vm398_vm3 = vcmask (!%p140_p2), 64512  }
   0x8   : > { %327 = vmatprep.subr.bf16.mxu0 (!%p140_p2), %v559_v1  ;;  %500 = vmatprep.subr.bf16.mxu1 (!%p140_p2), %v559_v1  ;;  %v320_v12 = vsel (!%p140_p2), %vm318_vm1, 4294967295, %v560_v11  ;;  %v538_v14 = vld [vmem:[%s671_s1 + $0x48] ss:$0 sps:$4 sm:$0x33] (!%p140_p2)   ;;  %v473_v23 = vld [vmem:[%s672_s2] ss:$0 sm:$0xff] (!%p140_p2) }
   0x9   : > { %v321_v15 = vsel (!%p140_p2), %vm319_vm2, %v320_v12, 0 }
   0xa   : > { %v323_v16 = vand.u32 (!%p140_p2), %v538_v14, %v321_v15 }
   0xb   : > { %328 = vmatpush1.bf16.msra.mxu0 (!%p140_p2), %v530_v2  ;;  %510 = vmatpush1.bf16.msra.mxu1 (!%p140_p2), %v530_v2 }
   0xc   : > { %329 = vmatprep.subr.bf16.mxu0 (!%p140_p2), %v559_v1  ;;  %501 = vmatprep.subr.bf16.mxu1 (!%p140_p2), %v559_v1 }
   0xd   : > { %s675_s20 = smov (!%p165_p3, %s468_s20), 15 }
   0xe   : > { %s498_s23 = sshll.u32 %s675_s20, 3 }
   0xf   : > { %330 = vmatpush1.bf16.msra.mxu0 %v531_v3  ;;  %511 = vmatpush1.bf16.msra.mxu1 %v531_v3  ;;  %s609_s26 = scalar_lea.vmem %s670_s0, %s498_s23  ;;  %s649_s17 = scalar_lea.vmem %s673_s3, %s498_s23 }
  0x10   : > { %331 = vmatprep.subr.bf16.mxu0 %v559_v1  ;;  %502 = vmatprep.subr.bf16.mxu1 %v559_v1  ;;  %v541_v6 = vld [vmem:[%s609_s26 + $0x4] ss:$8 sps:$4 sm:$0xff]   ;;  %v539_v17 = vld [vmem:[%s609_s26] ss:$8 sps:$4 sm:$0xff]   ;;  %v545_v19 = vld [vmem:[%s609_s26 + $0x14] ss:$8 sps:$4 sm:$0xff]  }
  0x11   : > { %v544_v7 = vld [vmem:[%s609_s26 + $0x24] ss:$8 sps:$4 sm:$0xff]   ;;  %492 = vmatprep.mubr.msk.bf16.mxu0 %vm305_vm0, %v541_v6  ;;  %v542_v18 = vld [vmem:[%s609_s26 + $0x20] ss:$8 sps:$4 sm:$0xff]   ;;  %v547_v20 = vld [vmem:[%s609_s26 + $0x34] ss:$8 sps:$4 sm:$0xff]  }
  0x12   : > { %494 = vmatprep.mubr.msk.bf16.mxu1 %vm305_vm0, %v544_v7  ;;  %v549_v21 = vld [vmem:[%s609_s26 + $0x10] ss:$8 sps:$4 sm:$0xff]  }
  0x13   : > { %332 = vmatpush1.bf16.msra.mxu0 %v532_v4  ;;  %512 = vmatpush1.bf16.msra.mxu1 %v532_v4  ;;  %v550_v22 = vld [vmem:[%s609_s26 + $0x30] ss:$8 sps:$4 sm:$0xff]  }
  0x14   : > { %333 = vmatprep.subr.bf16.mxu0 %v559_v1  ;;  %503 = vmatprep.subr.bf16.mxu1 %v559_v1 }
  0x17   : > { %334 = vmatpush1.bf16.msra.mxu0 %v533_v5  ;;  %513 = vmatpush1.bf16.msra.mxu1 %v533_v5 }
  0x18   : > { %335 = vmatprep.subr.bf16.mxu0 %v559_v1  ;;  %504 = vmatprep.subr.bf16.mxu1 %v559_v1 }
  0x1b   : > { %336 = vmatpush1.bf16.msra.mxu0 %v534_v8  ;;  %514 = vmatpush1.bf16.msra.mxu1 %v534_v8 }
  0x1c   : > { %337 = vmatprep.subr.bf16.mxu0 %v559_v1  ;;  %505 = vmatprep.subr.bf16.mxu1 %v559_v1 }
  0x1f   : > { %338 = vmatpush1.bf16.msra.mxu0 %v535_v9  ;;  %515 = vmatpush1.bf16.msra.mxu1 %v535_v9 }
  0x20   : > { %339 = vmatprep.subr.bf16.mxu0 %v559_v1  ;;  %506 = vmatprep.subr.bf16.mxu1 %v559_v1 }
  0x23   : > { %340 = vmatpush1.bf16.msra.mxu0 %v536_v10  ;;  %516 = vmatpush1.bf16.msra.mxu1 %v536_v10 }
  0x24   : > { %341 = vmatprep.subr.bf16.mxu0 %v559_v1  ;;  %507 = vmatprep.subr.bf16.mxu1 %v559_v1 }
  0x27   : > { %342 = vmatpush1.bf16.msra.mxu0 %v537_v13  ;;  %517 = vmatpush1.bf16.msra.mxu1 %v537_v13 }
  0x28   : > { %343 = vmatprep.subr.bf16.mxu0 %v559_v1  ;;  %508 = vmatprep.subr.bf16.mxu1 %v559_v1 }
  0x2b   : > { %344 = vmatpush1.bf16.msra.mxu0 %v323_v16  ;;  %518 = vmatpush1.bf16.msra.mxu1 %v323_v16 }
  0x2e   : > { %358 = vmatmul.mubr.bf16.vlgmr.msra.gmra.mrb[0].mxu0 %v539_v17  ;;  %374 = vmatmul.mubr.bf16.vlgmr.msra.gmra.mrb[0].mxu1 %v542_v18 }
  0x2f   : > { %493 = vmatprep.mubr.msk.bf16.mxu0 %vm305_vm0, %v545_v19  ;;  %495 = vmatprep.mubr.msk.bf16.mxu1 %vm305_vm0, %v547_v20 }
  0x36   : > { %366 = vmatmul.mubr.bf16.gmra.mrb[4].mxu0 %v549_v21  ;;  %382 = vmatmul.mubr.bf16.gmra.mrb[4].mxu1 %v550_v22 }
 0x101   : > { %v359_v24 = vpop.f32.mrb[0].mxu0  ;;  %v375_v25 = vpop.f32.mrb[0].mxu1 }
 0x102   : > { %v360_v26 = vadd.f32 %v473_v23, %v359_v24  ;;  %v376_v27 = vadd.f32 %v473_v23, %v375_v25  ;;  %v361_v28 = vpop.f32.mrb[1].mxu0  ;;  %v377_v29 = vpop.f32.mrb[1].mxu1 }
 0x103   : > { %v362_v30 = vpop.f32.mrb[2].mxu0  ;;  %v378_v31 = vpop.f32.mrb[2].mxu1 }
 0x104   : > { %v390_v32 = vmax.f32 %v360_v26, 0.0  ;;  %v394_v33 = vmax.f32 %v376_v27, 0.0  ;;  %v363_v34 = vadd.f32 %v473_v23, %v362_v30  ;;  %v379_v35 = vadd.f32 %v473_v23, %v378_v31  ;;  %v364_v36 = vpop.f32.mrb[3].mxu0  ;;  %v380_v37 = vpop.f32.mrb[3].mxu1 }
 0x106   : > { %399 = vst.msk [vmem:[%s649_s17] sm:$0xff] %vm398_vm3, %v390_v32  ;;  %403 = vst.msk [vmem:[%s649_s17 + $0x20] sm:$0xff] %vm398_vm3, %v394_v33  ;;  %v391_v38 = vmax.f32 %v363_v34, 0.0  ;;  %v395_v39 = vmax.f32 %v379_v35, 0.0 }
 0x108   : > { %400 = vst.msk [vmem:[%s649_s17 + $0x8] sm:$0xff] %vm398_vm3, %v391_v38  ;;  %404 = vst.msk [vmem:[%s649_s17 + $0x28] sm:$0xff] %vm398_vm3, %v395_v39 }
 0x109   : > { %v367_v40 = vpop.f32.mrb[4].mxu0  ;;  %v383_v41 = vpop.f32.mrb[4].mxu1 }
 0x10a   : > { %v368_v42 = vadd.f32 %v473_v23, %v367_v40  ;;  %v384_v43 = vadd.f32 %v473_v23, %v383_v41  ;;  %v369_v44 = vpop.f32.mrb[5].mxu0  ;;  %v385_v45 = vpop.f32.mrb[5].mxu1 }
 0x10b   : > { %v370_v46 = vpop.f32.mrb[6].mxu0  ;;  %v386_v47 = vpop.f32.mrb[6].mxu1 }
 0x10c   : > { %v392_v48 = vmax.f32 %v368_v42, 0.0  ;;  %v396_v49 = vmax.f32 %v384_v43, 0.0  ;;  %v371_v50 = vadd.f32 %v473_v23, %v370_v46  ;;  %v387_v51 = vadd.f32 %v473_v23, %v386_v47  ;;  %v372_v52 = vpop.f32.mrb[7].mxu0  ;;  %v388_v53 = vpop.f32.mrb[7].mxu1 }
 0x10e   : > { %401 = vst.msk [vmem:[%s649_s17 + $0x10] sm:$0xff] %vm398_vm3, %v392_v48  ;;  %405 = vst.msk [vmem:[%s649_s17 + $0x30] sm:$0xff] %vm398_vm3, %v396_v49  ;;  %v393_v54 = vmax.f32 %v371_v50, 0.0  ;;  %v397_v55 = vmax.f32 %v387_v51, 0.0 }
 0x110   : > { %402 = vst.msk [vmem:[%s649_s17 + $0x18] sm:$0xff] %vm398_vm3, %v393_v54  ;;  %406 = vst.msk [vmem:[%s649_s17 + $0x38] sm:$0xff] %vm398_vm3, %v397_v55 }
 0x111 PF: > { %s13_s12 = sadd.s32 1, %s557_s12  }
 0x112   : > { %p10_p4 = scmp.ge.s32.totalorder %s13_s12, 4  }
 0x114   :  { %12 = sbr.rel (!%p10_p4) target bundleno = 1 (0x1), region = 62 }

// kernel: split_resnet_forward.6
= control target key start
LH: loop header
LB: loop body
LE: loop exit
PB: predicated region body
PF: predicated region fallthrough
CT: control target
= control target key end

     0   :  { %vm56_vm0 = vcmask 293888   ;;  %vm63_vm1 = vcmask 1041408   ;;  %vm120_vm2 = vcmask 31744   ;;  %s208_s1 = inlined_call_operand.vmem [shape: bf16[36,4], index: 1, kind: input, shape index: {}]   ;;  %s209_s0 = inlined_call_operand.vmem [shape: bf16[32,36], index: 0, kind: input, shape index: {}]   ;;  %s210_s2 = inlined_call_operand.vmem [shape: f32[1,4], index: 2, kind: input, shape index: {}]   ;;  %s211_s3 = inlined_call_operand.vmem [shape: f32[32,4], index: 3, kind: output, shape index: {}]  }
   0x1   :  { %v153_v0 = vld [vmem:[%s208_s1] sm:$0xff]   ;;  %v154_v1 = vld [vmem:[%s208_s1 + $0x8] sm:$0xff]   ;;  %v155_v3 = vld [vmem:[%s208_s1 + $0x10] ss:$0 sps:$4 sm:$0x33]  }
   0x2   :  { %142 = vmatprep.subr.bf16.mxu0 %v153_v0  ;;  %v156_v2 = vld [vmem:[%s209_s0] sm:$0xff]   ;;  %v65_v4 = vsel %vm63_vm1, %v155_v3, 0  ;;  %v157_v5 = vld [vmem:[%s209_s0 + $0x8] sm:$0xff]  }
   0x3   :  { %143 = vmatpush3.bf16.msra.mxu0 %v153_v0  ;;  %148 = vmatprep.mubr.msk.bf16.mxu0 %vm56_vm0, %v156_v2  ;;  %v129_v6 = vld [vmem:[%s210_s2] ss:$0 sm:$0xff] }
   0x4   :  { %144 = vmatprep.subr.bf16.mxu0 %v154_v1 }
   0x7   :  { %145 = vmatpush3.bf16.msra.mxu0 %v154_v1 }
   0x8   :  { %152 = vmatprep.subr.msk.bf16.mxu0 %vm63_vm1, %v155_v3 }
   0xb   :  { %147 = vmatpush3.bf16.msra.mxu0 %v65_v4 }
   0xe   :  { %149 = vmatmul.mubr.msk.bf16.vlgmr.msra.gmra.mrb[0].mxu0 %vm56_vm0, %v157_v5 }
  0xe1   :  { %v150_v7 = vpop.f32.mrb[0].mxu0 }
  0xe2   :  { %v110_v8 = vadd.f32 %v150_v7, %v129_v6  ;;  %v101_v9 = vpop.f32.mrb[1].mxu0 }
  0xe3   :  { %v102_v10 = vadd.f32 %v129_v6, %v101_v9  ;;  %v151_v11 = vpop.f32.mrb[2].mxu0 }
  0xe4   :  { %v118_v12 = vmax.f32 %v110_v8, 0.0  ;;  %v113_v13 = vadd.f32 %v151_v11, %v129_v6  ;;  %v104_v14 = vpop.f32.mrb[3].mxu0 }
  0xe5   :  { %v116_v15 = vmax.f32 %v102_v10, 0.0  ;;  %v105_v16 = vadd.f32 %v129_v6, %v104_v14 }
  0xe6   :  { %123 = vst.msk [vmem:[%s211_s3 + $0x10] sm:$0xff] %vm120_vm2, %v118_v12  ;;  %v119_v17 = vmax.f32 %v113_v13, 0.0 }
  0xe7   :  { %121 = vst.msk [vmem:[%s211_s3] sm:$0xff] %vm120_vm2, %v116_v15  ;;  %v117_v18 = vmax.f32 %v105_v16, 0.0 }
  0xe8   :  { %124 = vst.msk [vmem:[%s211_s3 + $0x18] sm:$0xff] %vm120_vm2, %v119_v17 }
  0xe9   :  { %122 = vst.msk [vmem:[%s211_s3 + $0x8] sm:$0xff] %vm120_vm2, %v117_v18 }

// kernel: split_resnet_forward.7
= control target key start
LH: loop header
LB: loop body
LE: loop exit
PB: predicated region body
PF: predicated region fallthrough
CT: control target
= control target key end

     0   :  { %vm55_vm0 = vcmask 1041408   ;;  %vm48_vm1 = vcmask 31744   ;;  %vm129_vm2 = vcmask 1043456   ;;  %vm122_vm3 = vcmask 64512   ;;  %s586_s0 = inlined_call_operand.vmem [shape: f32[32,4], index: 0, kind: input, shape index: {}]   ;;  %s587_s1 = inlined_call_operand.vmem [shape: bf16[4,16], index: 1, kind: input, shape index: {}]   ;;  %s588_s2 = inlined_call_operand.vmem [shape: f32[1,16], index: 2, kind: input, shape index: {}]   ;;  %s589_s3 = inlined_call_operand.vmem [shape: f32[32,8], index: 3, kind: input, shape index: {}]   ;;  %s590_s4 = inlined_call_operand.vmem [shape: bf16[8,16], index: 4, kind: input, shape index: {}]   ;;  %s591_s5 = inlined_call_operand.vmem [shape: f32[1,16], index: 5, kind: input, shape index: {}]   ;;  %s592_s6 = inlined_call_operand.vmem [shape: f32[2,32], index: 6, kind: input, shape index: {}]   ;;  %s593_s7 = inlined_call_operand.vmem [shape: f32[16,10], index: 7, kind: input, shape index: {}]   ;;  %s594_s8 = inlined_call_operand.vmem [shape: f32[1,10], index: 8, kind: input, shape index: {}]   ;;  %s595_s9 = inlined_call_operand.hbm [shape: f32[2,10], index: 9, kind: output, shape index: {}]  }
   0x1   :  { %v40_v0 = vld [vmem:[%s587_s1] sm:$0x3]  ;;  %v35_v2 = vld [vmem:[%s586_s0 + $0x8] sm:$0xff]  ;;  %v36_v5 = vld [vmem:[%s586_s0 + $0x10] sm:$0xff] }
   0x2   :  { %v34_v1 = vld [vmem:[%s586_s0] sm:$0xff]  ;;  %438 = vmatprep.subr.msk.bf16.mxu0 %vm55_vm0, %v40_v0  ;;  %v57_v3 = vsel %vm55_vm0, %v40_v0, 0  ;;  %v37_v6 = vld [vmem:[%s586_s0 + $0x18] sm:$0xff]  ;;  %v109_v10 = vld [vmem:[%s589_s3 + $0x8] sm:$0xff] }
   0x3   :  { %v38_v4 = vpack.c.bf16 %v35_v2, %v34_v1  ;;  %v114_v7 = vld [vmem:[%s590_s4] sm:$0xf]  ;;  %388 = vmatpush3.bf16.msra.mxu0 %v57_v3  ;;  %v39_v8 = vpack.c.bf16 %v37_v6, %v36_v5 }
   0x4   :  { %v108_v9 = vld [vmem:[%s589_s3] sm:$0xff]  ;;  %439 = vmatprep.subr.msk.bf16.mxu0 %vm129_vm2, %v114_v7  ;;  %v131_v11 = vsel %vm129_vm2, %v114_v7, 0 }
   0x5   :  { %389 = vmatprep.mubr.msk.bf16.mxu0 %vm48_vm1, %v38_v4  ;;  %v112_v12 = vpack.c.bf16 %v109_v10, %v108_v9 }
   0x6   :  { %14 = vsyncpa [#allocation3], 0  ;;  %390 = vmatmul.mubr.msk.bf16.vlgmr.msra.gmra.mrb[0].mxu0 %vm48_vm1, %v39_v8  ;;  %v110_v13 = vld [vmem:[%s589_s3 + $0x10] sm:$0xff]  ;;  %v111_v14 = vld [vmem:[%s589_s3 + $0x18] sm:$0xff]  ;;  %v468_v16 = vmov 0.0|0.0   ;;  %vm469_vm4 = vmmov 0  }
   0x7   :  { %394 = vmatpush3.bf16.msra.mxu0 %v131_v11  ;;  %395 = vmatprep.mubr.msk.bf16.mxu0 %vm122_vm3, %v112_v12  ;;  %v113_v15 = vpack.c.bf16 %v111_v14, %v110_v13  ;;  %v470_v17 = vmov 0.0   ;;  %v364_v18 = vld [vmem:[%s588_s2] ss:$0 sm:$0xff]  ;;  %v266_v38 = vld [vmem:[%s593_s7 + $0x8] sm:$0xff]  ;;  %vm191_vm5 = vcmask 261120   ;;  %vm274_vm6 = vcmask 130048  }
   0x8   :  { %417 = vmatprep.subr.bf16.mxu1 %v468_v16  ;;  %407 = vmatprep.mubr.msk.f32.mxu1 %vm469_vm4, %v470_v17  ;;  %v367_v19 = vld [vmem:[%s591_s5] ss:$0 sm:$0xff]  ;;  %vm348_vm7 = vcmask 74752  }
   0x9   :  { %v432_v20 = vadd.f32 %v367_v19, %v364_v18  ;;  %v265_v37 = vld [vmem:[%s593_s7] sm:$0xff]  ;;  %s471_s7 = smov [#allocation2]  }
   0xa   :  { %v190_v39 = vld [vmem:[%s592_s6] sm:$0x3]  ;;  %v424_v40 = vpack.c.bf16 %v266_v38, %v265_v37  ;;  %s356_s14 = sshll.u32 %s471_s7, 4  ;;  %s357_s14 = int_to_ptr.vmem [resolvable:$true] %s356_s14 }
   0xb   :  { %v371_v43 = vld [vmem:[%s594_s8] ss:$0 sm:$0xff]  ;;  %s444_s6 = scalar_lea.vmem %s357_s14, 32  ;;  %p449_p1 = scmp.lt.s32.totalorder %s357_s14, %s357_s14 }
   0xc   :  { %p445_p0 = scmp.ne.s32.totalorder %s357_s14, %s444_s6  ;;  %p450_p2 = scmp.lt.s32.totalorder %s444_s6, %s444_s6 }
   0xe   :  { %p451_p3 = por %p450_p2, %p449_p1 }
  0x10   :  { %p452_p4 = pnand %p451_p3, %p445_p0 }
  0x12   :  { %396 = vmatmul.mubr.msk.bf16.vlgmr.msra.gmra.mrb[0].mxu0 %vm122_vm3, %v113_v15 }
  0xe5   :  { %v397_v21 = vpop.f32.mrb[0].mxu0 }
  0xe6   :  { %v426_v22 = vadd.f32 %v397_v21, %v364_v18  ;;  %v167_v23 = vpop.f32.mrb[1].mxu0 }
  0xe7   :  { %v428_v24 = vadd.f32 %v364_v18, %v167_v23  ;;  %v398_v25 = vpop.f32.mrb[2].mxu0 }
  0xe8   :  { %v427_v26 = vadd.f32 %v426_v22, %v367_v19  ;;  %v431_v27 = vadd.f32 %v432_v20, %v398_v25  ;;  %v170_v28 = vpop.f32.mrb[3].mxu0 }
  0xe9   :  { %v429_v29 = vadd.f32 %v428_v24, %v367_v19  ;;  %v433_v30 = vadd.f32 %v432_v20, %v170_v28 }
  0xea   :  { %v188_v31 = vmax.f32 %v427_v26, 0.0  ;;  %v189_v32 = vmax.f32 %v431_v27, 0.0 }
  0xeb   :  { %v186_v33 = vmax.f32 %v429_v29, 0.0  ;;  %v187_v34 = vmax.f32 %v433_v30, 0.0 }
  0xec   :  { %v421_v35 = vpack.c.bf16 %v189_v32, %v188_v31 }
  0xed   :  { %v418_v36 = vpack.c.bf16 %v187_v34, %v186_v33 }
  0xef   :  { %419 = vmatpush3.bf16.msra.mxu1 %v418_v36 }
  0xf0   :  { %420 = vmatprep.subr.bf16.mxu1 %v468_v16 }
  0xf3   :  { %422 = vmatpush3.bf16.msra.mxu1 %v421_v35 }
  0xf4   :  { %423 = vmatprep.subr.bf16.mxu1 %v468_v16 }
  0xf6   :  { %408 = vmatmul.mubr.msk.f32.vlgmr.msra.gmra.mrb[0].mxu1 %vm191_vm5, %v190_v39 }
  0xf7   :  { %425 = vmatpush3.bf16.msra.mxu1 %v424_v40  ;;  %414 = vmatprep.mubr.msk.f32.mxu1 %vm469_vm4, %v470_v17 }
 0x1c9   :  { %v261_v41 = vpop.f32.mrb[0].mxu1 }
 0x1ca   :  { %v409_v42 = vpop.f32.mrb[1].mxu1  ;;  %415 = vmatmul.mubr.msk.f32.vlgmr.msra.gmra.mrb[2].mxu1 %vm274_vm6, %v261_v41 }
 0x29d   :  { %v344_v44 = vpop.f32.mrb[2].mxu1 }
 0x29e   :  { %v345_v45 = vadd.f32 %v371_v43, %v344_v44  ;;  %v416_v46 = vpop.f32.mrb[3].mxu1 }
 0x2a0   :  { %349 = vst.msk [vmem:[#allocation2] sm:$0x3] %vm348_vm7, %v345_v45 }
 0x2a1   :  { %455 = shalt.err (!%p452_p4)
}
 0x2a2   :  { %s456_s17 = scalar_lea.hbm %s595_s9, 32 }
 0x2a3   :  { %p457_p5 = scmp.ne.s32.totalorder %s595_s9, %s456_s17  ;;  %p460_p6 = scmp.lt.u32.totalorder %s456_s17, %s595_s9 }
 0x2a5   :  { %p462_p7 = pnand %p460_p6, %p457_p5 }
 0x2a7   :  { %465 = shalt.err (!%p462_p7)
}
 0x2a8   :  { %359 = dma.vmem_to_hbm [thread:$0]  %s357_s14, 32, %s595_s9, [#allocation3]  }
 0x2a9   :  { %466 = dma.done.wait [#allocation3], 32  }
 0x2aa   :  { %467 = vsyncadd [#allocation3], 4294967264 }
 0x2ab   :  { %363 = vsyncpa [#allocation3], 1 }

</bundles_post_ra>
